<compile_context>
chip_gen: v5e
topology: v5e:2x2
jax: 0.10.0
libtpu: 0.0.40
codegen_flags: <defaults>
</compile_context>

<pallas_src>
import jax
import jax.numpy as jnp
from jax import lax
from jax.experimental import pallas as pl
from jax.experimental.pallas import tpu as pltpu


# ----------------------------------------------------------------------------------
# Kernel
# ----------------------------------------------------------------------------------
def _make_kernel(assume_symmetric_adj: bool):
    def kernel(x_ref, adj_ref, w1_ref, b1_ref, w2_ref, b_eff_ref, wl_ref, out_ref):
        x = x_ref[...]                                    # (TB, N, F)  MXU dtype
        adj = adj_ref[...]                                # (TB, N, N)  MXU dtype
        TB, N, F = x.shape
        H = w1_ref.shape[1]

        # ---- DenseGCNConv self-loops: diag(adj)=1, fused with the single adj read ----
        row = lax.broadcasted_iota(jnp.int32, (N, N), 0)
        col = lax.broadcasted_iota(jnp.int32, (N, N), 1)
        diag = (row == col)[None, :, :]                   # (1, N, N) bool
        adj = jnp.where(diag, jnp.ones((), adj.dtype), adj)

        # ---- symmetric normalization (deg / dinv kept in f32) ----
        deg = jnp.sum(adj.astype(jnp.float32), axis=-1, keepdims=True)   # (TB, N, 1)
        dinv = lax.rsqrt(jnp.maximum(deg, 1.0))                          # (TB, N, 1)
        dinv2 = dinv[:, :, 0]                                            # (TB, N)

        # ---- gc1 feature transform: one tall (TB*N, F) @ (F, H) MXU matmul ----
        xw = jnp.dot(x.reshape(TB * N, F), w1_ref[...],
                     preferred_element_type=jnp.float32).reshape(TB, N, H)
        z = dinv * xw                                                    # (TB, N, H) f32
        wld = wl_ref[...] * dinv2                                        # (TB, N)    f32

        if assume_symmetric_adj:
            # Fold the head's adjacency contraction into the SAME MXU sweep over adj:
            # column H of the augmented einsum equals (wl*dinv) @ adj (adj symmetric).
            z_aug = jnp.concatenate([z, wld[:, :, None]], axis=-1)       # (TB, N, H+1)
            agg = jnp.einsum('bnm,bmh->bnh', adj, z_aug.astype(adj.dtype),
                             preferred_element_type=jnp.float32)         # (TB, N, H+1)
            agg_h = agg[:, :, :H]
            v = agg[:, :, H]                                             # (TB, N)
        else:
            agg_h = jnp.einsum('bnm,bmh->bnh', adj, z.astype(adj.dtype),
                               preferred_element_type=jnp.float32)
            v = jnp.einsum('bn,bnm->bm', wld.astype(adj.dtype), adj,
                           preferred_element_type=jnp.float32)

        # gc1: relu(A_hat @ (X W1) + b1) with A_hat z == dinv*(adj@(dinv*z))
        h = jnp.maximum(dinv * agg_h + b1_ref[...], 0.0)                 # (TB, N, H)
        # TODO(synk): F.dropout(p, training=...) treated as identity (inference mode).

        # gc2 + LinearLayer(num_nodes, 1) head contracted algebraically:
        #   out = (((wl*dinv) @ adj) * dinv) . h @ W2 + (sum(wl)*b2 + bl)
        u = v * dinv2                                                    # (TB, N)
        g = jnp.sum(u[:, :, None] * h, axis=1)                           # (TB, H)
        out = (jnp.dot(g.astype(w2_ref.dtype), w2_ref[...],
                       preferred_element_type=jnp.float32)
               + b_eff_ref[...])                                         # (TB, C)

        out_ref[0] = out.astype(out_ref.dtype)

    return kernel


# ----------------------------------------------------------------------------------
# Tiling heuristics
# ----------------------------------------------------------------------------------
def _vmem_budget_bytes():
    """(tile-selection budget, vmem_limit_bytes) sized per TPU generation."""
    cap = None
    try:
        cap = getattr(pltpu.get_tpu_info(), "vmem_capacity_bytes", None)
    except Exception:
        cap = None
    if cap is None:
        cap = 64 * 1024 * 1024                    # conservative (v7x-sized) default
    if cap >= 100 * 1024 * 1024:                  # v5e / v6e: 128 MiB physical VMEM
        return 64 * 1024 * 1024, 96 * 1024 * 1024
    return 32 * 1024 * 1024, 48 * 1024 * 1024     # v7x: 64 MiB physical VMEM


def _per_batch_bytes(N, F, H, item):
    """Honest per-batch-row VMEM estimate (incl. double-buffered input blocks)."""
    f32 = 4
    blocks = 2 * item * (N * F + N * N)           # x/adj input blocks, double-buffered
    adj_copy = item * N * N                       # self-loop `where` result
    inter = f32 * N * (3 * (H + 1) + H + 8)       # xw, z_aug, agg, h + deg/dinv/u/v
    inter += item * N * (H + 1)                   # z_aug cast to the MXU dtype
    return blocks + adj_copy + inter


def _pick_batch_tile(B, per_b, budget):
    cap = max(int(budget // max(per_b, 1)), 1)
    if B >= 2:
        # >=2 grid steps so the "parallel" batch axis can shard across v7x's 2 TCs.
        cap = min(cap, max(B // 2, 1))
    cap = min(cap, B)
    for t in range(cap, 0, -1):                   # largest divisor of B that fits
        if B % t == 0:
            return t
    return 1
    # TODO(synk): for very large N (f32 (N,N) block > budget even at TB=1), add a second
    # "arbitrary" grid axis over the adjacency contraction dim with a VMEM accumulator.


# ----------------------------------------------------------------------------------
# Wrapper
# ----------------------------------------------------------------------------------
def reggnn_forward(x, adj, params, *, batch_tile=None, use_bf16_matmul=False,
                   assume_symmetric_adj=True):
    B, N, F = x.shape
    H = params['w1'].shape[1]
    C = params['w2'].shape[1]
    f32 = jnp.float32
    # bf16 operands / f32 accumulation is the fast MXU path on v6e / v7x.
    compute_dt = jnp.bfloat16 if use_bf16_matmul else f32
    item = jnp.dtype(compute_dt).itemsize

    tile_budget, vmem_limit = _vmem_budget_bytes()
    if batch_tile is None:
        batch_tile = _pick_batch_tile(B, _per_batch_bytes(N, F, H, item), tile_budget)
    TB = int(batch_tile)
    assert B % TB == 0, "batch_tile must divide the batch size"
    steps = B // TB

    # Grid-invariant head constants hoisted out of the kernel.
    b_eff = (jnp.sum(params['wl']) * params['b2'] + params['bl']).astype(f32)  # (1, C)

    kernel = _make_kernel(assume_symmetric_adj)

    def batched3(shape):
        return pl.BlockSpec(shape, lambda b: (b, 0, 0))

    def resident(shape):
        return pl.BlockSpec(shape, lambda b: (0,) * len(shape))

    out3 = pl.pallas_call(
        kernel,
        out_shape=jax.ShapeDtypeStruct((steps, TB, C), f32),
        grid=(steps,),
        in_specs=[batched3((TB, N, F)),               # x
                  batched3((TB, N, N)),               # adj
                  resident((F, H)),                   # w1 (MXU dtype)
                  resident((1, H)),                   # b1 (f32)
                  resident((H, C)),                   # w2 (MXU dtype)
                  resident((1, C)),                   # b_eff = sum(wl)*b2 + bl (f32)
                  resident((1, N))],                  # wl  (LinearLayer weight, f32)
        out_specs=pl.BlockSpec((1, TB, C), lambda b: (b, 0, 0)),
        compiler_params=pltpu.CompilerParams(
            dimension_semantics=("parallel",),        # batch-independent -> 2-TC on v7x
            vmem_limit_bytes=vmem_limit),
    )(x.astype(compute_dt), adj.astype(compute_dt),
      params['w1'].astype(compute_dt), params['b1'].astype(f32),
      params['w2'].astype(compute_dt), b_eff,
      params['wl'].astype(f32))

    out = out3.reshape(B, C)
    # Lin2(num_class, 1): tiny (B,C)@(C,1) done in the wrapper (avoids a lane-1 kernel
    # output and its masked partial-store DMA per grid step).
    pred = out @ params['wl2'].T + params['bl2']
    return pred, out


# ----------------------------------------------------------------------------------
# Pure-JAX reference (DenseGCNConv x2 + the two linear heads)
# ----------------------------------------------------------------------------------
def reggnn_reference(x, adj, params):
    B, N, _ = adj.shape
    eye = jnp.eye(N, dtype=adj.dtype)[None]
    adj = jnp.where(eye > 0, 1.0, adj)
    deg = jnp.maximum(adj.sum(-1, keepdims=True), 1.0)
    dinv = deg ** -0.5
    adj_n = dinv * adj * jnp.swapaxes(dinv, 1, 2)
    h = jnp.maximum(adj_n @ (x @ params['w1']) + params['b1'], 0.0)
    h2 = adj_n @ (h @ params['w2']) + params['b2']
    out = jnp.einsum('ln,bnc->bc', params['wl'], h2) + params['bl'][0]
    pred = out @ params['wl2'].T + params['bl2']
    return pred, out


def init_params(key, N, F, H, C):
    ks = jax.random.split(key, 8)
    g = lambda k, shape, fan_in: (jax.random.normal(k, shape, jnp.float32)
                                  / jnp.sqrt(jnp.float32(fan_in)))
    return {
        'w1': g(ks[0], (F, H), F),
        'b1': 0.01 * jax.random.normal(ks[1], (1, H), jnp.float32),
        'w2': g(ks[2], (H, C), H),
        'b2': 0.01 * jax.random.normal(ks[3], (1, C), jnp.float32),
        'wl': g(ks[4], (1, N), N),        # LinearLayer(num_nodes, 1) weight
        'bl': 0.01 * jax.random.normal(ks[5], (1, 1), jnp.float32),
        'wl2': g(ks[6], (1, C), C),       # Lin2(num_class, 1) weight
        'bl2': 0.01 * jax.random.normal(ks[7], (1, 1), jnp.float32),
    }


if __name__ == "__main__":
    B, N, F, H, C = 2, 16, 16, 32, 8   # batch, num_nodes, feature_dim, hidden, num_class
    key = jax.random.PRNGKey(0)
    kx, ka, kp = jax.random.split(key, 3)

    x = jax.random.normal(kx, (B, N, F), jnp.float32)
    a = jax.random.bernoulli(ka, 0.3, (B, N, N)).astype(jnp.float32)
    adj = jnp.maximum(a, jnp.swapaxes(a, 1, 2))          # symmetric 0/1 adjacency

    params = init_params(kp, N, F, H, C)
    pred_gold, out_gold = reggnn_reference(x, adj, params)

    # f32 MXU path (exact within 1e-3 of the reference).
    pred, out = jax.block_until_ready(reggnn_forward(x, adj, params))
    assert pred.shape == (B, 1) and out.shape == (B, C)
    assert jnp.allclose(pred, pred_gold, atol=1e-3, rtol=1e-3)
    assert jnp.allclose(out, out_gold, atol=1e-3, rtol=1e-3)

    # bf16 operands / f32 accumulation (the v6e / v7x fast path) -- looser tolerance.
    pred_bf, out_bf = jax.block_until_ready(
        reggnn_forward(x, adj, params, use_bf16_matmul=True))
    assert jnp.allclose(pred_bf, pred_gold, atol=1e-1, rtol=1e-1)
    assert jnp.allclose(out_bf, out_gold, atol=1e-1, rtol=1e-1)

    # Non-symmetric fallback path (separate head contraction) must also match.
    pred_ns, out_ns = jax.block_until_ready(
        reggnn_forward(x, adj, params, assume_symmetric_adj=False))
    assert jnp.allclose(out_ns, out_gold, atol=1e-3, rtol=1e-3)

    print("KERNEL_OK")
</pallas_src>

<mosaic_0001>
module attributes {stable_mosaic.version = 11 : i64} {
  func.func @kernel(%arg0: i32, %arg1: memref<1x16x16xf32, #tpu.memory_space<vmem>>, %arg2: memref<1x16x16xf32, #tpu.memory_space<vmem>>, %arg3: memref<16x32xf32, #tpu.memory_space<vmem>>, %arg4: memref<1x32xf32, #tpu.memory_space<vmem>>, %arg5: memref<32x8xf32, #tpu.memory_space<vmem>>, %arg6: memref<1x8xf32, #tpu.memory_space<vmem>>, %arg7: memref<1x16xf32, #tpu.memory_space<vmem>>, %arg8: memref<1x1x8xf32, #tpu.memory_space<vmem>>) attributes {dimension_semantics = [#tpu.dimension_semantics<parallel>], iteration_bounds = array<i64: 2>, scalar_prefetch = 0 : i64, scratch_operands = 0 : i64, tpu.core_type = #tpu.core_type<tc>, window_params = [{transform_indices = @transform_0, window_bounds = array<i64: 1, 16, 16>}, {transform_indices = @transform_1, window_bounds = array<i64: 1, 16, 16>}, {pipeline_mode = #tpu.pipeline_mode<synchronous>, transform_indices = @transform_2, window_bounds = array<i64: 16, 32>}, {pipeline_mode = #tpu.pipeline_mode<synchronous>, transform_indices = @transform_3, window_bounds = array<i64: 1, 32>}, {pipeline_mode = #tpu.pipeline_mode<synchronous>, transform_indices = @transform_4, window_bounds = array<i64: 32, 8>}, {pipeline_mode = #tpu.pipeline_mode<synchronous>, transform_indices = @transform_5, window_bounds = array<i64: 1, 8>}, {pipeline_mode = #tpu.pipeline_mode<synchronous>, transform_indices = @transform_6, window_bounds = array<i64: 1, 16>}, {transform_indices = @transform_7, window_bounds = array<i64: 1, 1, 8>}]} {
    %c0 = arith.constant 0 : index
    %c0_0 = arith.constant 0 : index
    %c0_1 = arith.constant 0 : index
    %0 = vector.load %arg1[%c0, %c0_0, %c0_1] : memref<1x16x16xf32, #tpu.memory_space<vmem>>, vector<1x16x16xf32>
    %c0_2 = arith.constant 0 : index
    %c0_3 = arith.constant 0 : index
    %c0_4 = arith.constant 0 : index
    %1 = vector.load %arg2[%c0_2, %c0_3, %c0_4] : memref<1x16x16xf32, #tpu.memory_space<vmem>>, vector<1x16x16xf32>
    %2 = tpu.iota {dimensions = array<i32: 0>} : vector<16x16xi32>
    %3 = tpu.iota {dimensions = array<i32: 1>} : vector<16x16xi32>
    %4 = arith.cmpi eq, %2, %3 : vector<16x16xi32>
    %5 = vector.shape_cast %4 : vector<16x16xi1> to vector<1x16x16xi1>
    %cst = arith.constant 1.000000e+00 : f32
    %6 = vector.broadcast %cst : f32 to vector<1x16x16xf32>
    %7 = arith.select %5, %6, %1 : vector<1x16x16xi1>, vector<1x16x16xf32>
    %cst_5 = arith.constant dense<0.000000e+00> : vector<1x16xf32>
    %8 = vector.multi_reduction <add>, %7, %cst_5 [2] : vector<1x16x16xf32> to vector<1x16xf32>
    %9 = vector.shape_cast %8 : vector<1x16xf32> to vector<1x16x1xf32>
    %cst_6 = arith.constant 1.000000e+00 : f32
    %10 = vector.broadcast %cst_6 : f32 to vector<1x16x1xf32>
    %11 = arith.maximumf %9, %10 : vector<1x16x1xf32>
    %12 = math.rsqrt %11 : vector<1x16x1xf32>
    %13 = vector.shape_cast %12 : vector<1x16x1xf32> to vector<1x16xf32>
    %14 = vector.shape_cast %0 : vector<1x16x16xf32> to vector<16x16xf32>
    %c0_7 = arith.constant 0 : index
    %c0_8 = arith.constant 0 : index
    %15 = vector.load %arg3[%c0_7, %c0_8] : memref<16x32xf32, #tpu.memory_space<vmem>>, vector<16x32xf32>
    %cst_9 = arith.constant dense<0.000000e+00> : vector<16x32xf32>
    %16 = tpu.matmul %14, %15, %cst_9 {dimension_numbers = #tpu.dot_dimension_numbers<[1], [0], [0], [1], [0, 0, 1, 1], [], []>} : vector<16x16xf32>, vector<16x32xf32>, vector<16x32xf32> -> vector<16x32xf32>
    %17 = vector.shape_cast %16 : vector<16x32xf32> to vector<1x16x32xf32>
    %18 = vector.broadcast %12 : vector<1x16x1xf32> to vector<1x16x32xf32>
    %19 = arith.mulf %18, %17 : vector<1x16x32xf32>
    %c0_10 = arith.constant 0 : index
    %c0_11 = arith.constant 0 : index
    %20 = vector.load %arg7[%c0_10, %c0_11] : memref<1x16xf32, #tpu.memory_space<vmem>>, vector<1x16xf32>
    %21 = arith.mulf %20, %13 : vector<1x16xf32>
    %22 = vector.shape_cast %21 : vector<1x16xf32> to vector<1x16x1xf32>
    %23 = tpu.concatenate %19, %22 in 2 : vector<1x16x32xf32>, vector<1x16x1xf32> -> vector<1x16x33xf32>
    "tpu.trace_start"() <{level = 10 : i32, message = "bnm,bmh->bnh"}> : () -> ()
    %cst_12 = arith.constant dense<0.000000e+00> : vector<1x16x33xf32>
    %24 = tpu.matmul %7, %23, %cst_12 {dimension_numbers = #tpu.dot_dimension_numbers<[2], [1], [1], [2], [0, 0, 0, 1, 1, 2], [0], [0]>} : vector<1x16x16xf32>, vector<1x16x33xf32>, vector<1x16x33xf32> -> vector<1x16x33xf32>
    "tpu.trace_stop"() : () -> ()
    %25 = vector.extract_strided_slice %24 {offsets = [0, 0, 0], sizes = [1, 16, 32], strides = [1, 1, 1]} : vector<1x16x33xf32> to vector<1x16x32xf32>
    %26 = vector.extract_strided_slice %24 {offsets = [0, 0, 32], sizes = [1, 16, 1], strides = [1, 1, 1]} : vector<1x16x33xf32> to vector<1x16x1xf32>
    %27 = vector.shape_cast %26 : vector<1x16x1xf32> to vector<1x16xf32>
    %28 = vector.broadcast %12 : vector<1x16x1xf32> to vector<1x16x32xf32>
    %29 = arith.mulf %28, %25 : vector<1x16x32xf32>
    %c0_13 = arith.constant 0 : index
    %c0_14 = arith.constant 0 : index
    %30 = vector.load %arg4[%c0_13, %c0_14] : memref<1x32xf32, #tpu.memory_space<vmem>>, vector<1x32xf32>
    %31 = vector.shape_cast %30 : vector<1x32xf32> to vector<1x1x32xf32>
    %32 = vector.broadcast %31 : vector<1x1x32xf32> to vector<1x16x32xf32>
    %33 = arith.addf %29, %32 : vector<1x16x32xf32>
    %cst_15 = arith.constant 0.000000e+00 : f32
    %34 = vector.broadcast %cst_15 : f32 to vector<1x16x32xf32>
    %35 = arith.maximumf %33, %34 : vector<1x16x32xf32>
    %36 = arith.mulf %27, %13 : vector<1x16xf32>
    %37 = vector.shape_cast %36 : vector<1x16xf32> to vector<1x16x1xf32>
    %38 = vector.broadcast %37 : vector<1x16x1xf32> to vector<1x16x32xf32>
    %39 = arith.mulf %38, %35 : vector<1x16x32xf32>
    %cst_16 = arith.constant dense<0.000000e+00> : vector<1x32xf32>
    %40 = vector.multi_reduction <add>, %39, %cst_16 [1] : vector<1x16x32xf32> to vector<1x32xf32>
    %c0_17 = arith.constant 0 : index
    %c0_18 = arith.constant 0 : index
    %41 = vector.load %arg5[%c0_17, %c0_18] : memref<32x8xf32, #tpu.memory_space<vmem>>, vector<32x8xf32>
    %cst_19 = arith.constant dense<0.000000e+00> : vector<1x8xf32>
    %42 = tpu.matmul %40, %41, %cst_19 {dimension_numbers = #tpu.dot_dimension_numbers<[1], [0], [0], [1], [0, 0, 1, 1], [], []>} : vector<1x32xf32>, vector<32x8xf32>, vector<1x8xf32> -> vector<1x8xf32>
    %c0_20 = arith.constant 0 : index
    %c0_21 = arith.constant 0 : index
    %43 = vector.load %arg6[%c0_20, %c0_21] : memref<1x8xf32, #tpu.memory_space<vmem>>, vector<1x8xf32>
    %44 = arith.addf %42, %43 : vector<1x8xf32>
    %c0_22 = arith.constant 0 : index
    %c0_23 = arith.constant 0 : index
    %c0_24 = arith.constant 0 : index
    %45 = vector.load %arg8[%c0_22, %c0_23, %c0_24] : memref<1x1x8xf32, #tpu.memory_space<vmem>>, vector<1x1x8xf32>
    %46 = vector.shape_cast %45 : vector<1x1x8xf32> to vector<1x8xf32>
    %47 = vector.shape_cast %44 : vector<1x8xf32> to vector<1x1x8xf32>
    tpu.vector_store %arg8[%c0_22, %c0_23, %c0_24], %47 {strides = array<i32>} : memref<1x1x8xf32, #tpu.memory_space<vmem>>, vector<1x1x8xf32>,
    return
  }
  func.func @transform_0(%arg0: i32) -> (i32, i32, i32) {
    %c0_i32 = arith.constant 0 : i32
    %c0_i32_0 = arith.constant 0 : i32
    %c0_i32_1 = arith.constant 0 : i32
    return %arg0, %c0_i32, %c0_i32_0 : i32, i32, i32
  }
  func.func @transform_1(%arg0: i32) -> (i32, i32, i32) {
    %c0_i32 = arith.constant 0 : i32
    %c0_i32_0 = arith.constant 0 : i32
    %c0_i32_1 = arith.constant 0 : i32
    return %arg0, %c0_i32, %c0_i32_0 : i32, i32, i32
  }
  func.func @transform_2(%arg0: i32) -> (i32, i32) {
    %c0_i32 = arith.constant 0 : i32
    %c0_i32_0 = arith.constant 0 : i32
    %c0_i32_1 = arith.constant 0 : i32
    return %c0_i32, %c0_i32_0 : i32, i32
  }
  func.func @transform_3(%arg0: i32) -> (i32, i32) {
    %c0_i32 = arith.constant 0 : i32
    %c0_i32_0 = arith.constant 0 : i32
    %c0_i32_1 = arith.constant 0 : i32
    return %c0_i32, %c0_i32_0 : i32, i32
  }
  func.func @transform_4(%arg0: i32) -> (i32, i32) {
    %c0_i32 = arith.constant 0 : i32
    %c0_i32_0 = arith.constant 0 : i32
    %c0_i32_1 = arith.constant 0 : i32
    return %c0_i32, %c0_i32_0 : i32, i32
  }
  func.func @transform_5(%arg0: i32) -> (i32, i32) {
    %c0_i32 = arith.constant 0 : i32
    %c0_i32_0 = arith.constant 0 : i32
    %c0_i32_1 = arith.constant 0 : i32
    return %c0_i32, %c0_i32_0 : i32, i32
  }
  func.func @transform_6(%arg0: i32) -> (i32, i32) {
    %c0_i32 = arith.constant 0 : i32
    %c0_i32_0 = arith.constant 0 : i32
    %c0_i32_1 = arith.constant 0 : i32
    return %c0_i32, %c0_i32_0 : i32, i32
  }
  func.func @transform_7(%arg0: i32) -> (i32, i32, i32) {
    %c0_i32 = arith.constant 0 : i32
    %c0_i32_0 = arith.constant 0 : i32
    %c0_i32_1 = arith.constant 0 : i32
    return %arg0, %c0_i32, %c0_i32_0 : i32, i32, i32
  }
}

</mosaic_0001>

<bundles_post_ra>
// kernel: tpu_custom_call.1
= control target key start
LH: loop header
LB: loop body
LE: loop exit
PB: predicated region body
PF: predicated region fallthrough
CT: control target
= control target key end

     0   :  { %s1158_s0 = inlined_call_operand.vmem [shape: f32[2,16,16], index: 0, kind: input, shape index: {}]   ;;  %s1159_s1 = inlined_call_operand.hbm [shape: f32[2,16,16], index: 1, kind: input, shape index: {}]   ;;  %s1160_s2 = inlined_call_operand.hbm [shape: f32[16,32], index: 2, kind: input, shape index: {}]   ;;  %s1161_s3 = inlined_call_operand.vmem [shape: f32[1,32], index: 3, kind: input, shape index: {}]   ;;  %s1162_s4 = inlined_call_operand.vmem [shape: f32[32,8], index: 4, kind: input, shape index: {}]   ;;  %s1163_s5 = inlined_call_operand.vmem [shape: f32[1,8], index: 5, kind: input, shape index: {}]   ;;  %s1164_s6 = inlined_call_operand.vmem [shape: f32[1,16], index: 6, kind: input, shape index: {}]   ;;  %s1165_s7 = inlined_call_operand.hbm [shape: f32[2,1,8], index: 7, kind: output, shape index: {}]  }
   0x1   :  { %1168 = sst [smem:[#allocation11_spill]] %s1160_s2 }
   0x2   :  { %12 = vsyncpa [#allocation3], 0 }
   0x3   :  { %14 = vsyncpa [#allocation3 + $0x1], 0 }
   0x4   :  { %15 = vsyncpa [#allocation6], 0 }
   0x5   :  { %16 = vsyncpa [#allocation4], 0 }
   0x6   :  { %18 = vsyncpa [#allocation4 + $0x1], 0  ;;  %s945_s24 = smov 0   ;;  %s947_s25 = smov 0  }
   0x7   :  { %s949_s26 = smov 0   ;;  %s951_s27 = smov 0  }
   0x8 LB: > { %s966_s28 = sadd.s32 4294967295, %s898_s27   ;;  %s674_s29 = sadd.s32 4294967294, %s898_s27   ;;  %s898_s27 = sphi %s951_s27, %s1181_s27   ;;  %s894_s26 = sphi %s949_s26, %s1180_s26   ;;  %s890_s25 = sphi %s947_s25, %s1179_s25   ;;  %s886_s24 = sphi %s945_s24, %s1178_s24  }
   0x9   : > { %p70_p0 = scmp.ne.s32.totalorder %s890_s25, %s886_s24  ;;  %p71_p1 = scmp.eq.s32.totalorder %s966_s28, 0 }
   0xa   : > { %p199_p2 = scmp.eq.s32.totalorder %s966_s28, 1  ;;  %p205_p3 = scmp.eq.s32.totalorder %s674_s29, 1 }
   0xb   : > { %p975_p4 = por %p71_p1, %p70_p0  ;;  %p675_p5 = scmp.ge.s32.totalorder %s898_s27, 1 }
   0xc   : > { %p980_p6 = por %p205_p3, %p70_p0  ;;  %p212_p7 = scmp.lt.s32.totalorder %s898_s27, 3 }
   0xd   : > { %s1171_s2 = sld [smem:[#allocation11_spill]]  ;;  %s900_s13 = smov [#allocation5]  }
   0xe   : > { %p988_p8 = pnand %p675_p5, %p212_p7  ;;  %s225_s14 = sshll.u32 %s900_s13, 4  ;;  %s226_s14 = int_to_ptr.vmem [resolvable:$true] %s225_s14 }
   0xf   : > { %s998_s15 = sadd.s32 1, %s898_s27   ;;  %s1166_s16 = smov 128  }
  0x10   : > { %p705_p9 = pneg %p988_p8  ;;  %s1167_s17 = smov 8  }
  0x11   : > { %s54_s18 = ssub.s32 %s898_s27, %s998_s15  ;;  %s57_s19 = sadd.s32 1, %s894_s26 }
  0x12   : > { %p706_p10 = pnand %p705_p9, %p71_p1  ;;  %p55_p12 = scmp.eq.s32.totalorder %s54_s18, 0 }
  0x13   : > { %s223_s11 = sshll.u32 %s1171_s2, 4  ;;  %p64_p13 = scmp.ne.s32.totalorder %s894_s26, %s890_s25  ;;  %s224_s11 = int_to_ptr.hbm [resolvable:$true] %s223_s11 }
  0x14   : > { %708 = dma.hbm_to_vmem [thread:$0]  (!%p706_p10), %s224_s11, 256, %s226_s14, [#allocation6], %s1166_s16, %s1166_s16, %s1167_s17  }
  0x15   : > { %p65_p0 = scmp.eq.s32.totalorder %s898_s27, 0  ;;  %p1014_p3 = por %p199_p2, %p64_p13 }
  0x16   : > { %s1010_s20 = scalar_select %p55_p12, %s894_s26, %s57_s19  }
  0x17   : > { %p718_p5 = scmp.lt.s32.totalorder %s898_s27, 2  ;;  %s259_s22 = sand.u32 1, %s894_s26  }
  0x18   : > { %s693_s23 = sshll.u32 %s898_s27, 4  ;;  %p66_p7 = por %p65_p0, %p64_p13 }
  0x19   : > { %s678_s29 = sshll.u32 %s259_s22, 4  ;;  %s268_s11 = scalar_lea.hbm %s1159_s1, %s693_s23 }
  0x1a   : > { %s269_s13 = sshll.u32 %s268_s11, 4  ;;  %s263_s14 = scalar_lea.vmem [#allocation2], %s678_s29  ;;  %s270_s13 = int_to_ptr.hbm [resolvable:$true] %s269_s13 }
  0x1b   : > { %s271_s18 = sshll.u32 %s263_s14, 4  ;;  %p1024_p9 = pnand %p718_p5, %p66_p7  ;;  %s272_s18 = int_to_ptr.vmem [resolvable:$true] %s271_s18 }
  0x1c   : > { %s260_s16 = scalar_lea.sflag [#allocation3], %s259_s22  ;;  %s798_s17 = sshra.s32 %s270_s13, 4  ;;  %s799_s17 = int_to_ptr.hbm [resolvable:$true] %s798_s17 }
  0x1d   : > { %s800_s2 = scalar_lea.hbm %s799_s17, 16  ;;  %p802_p10 = pneg %p1024_p9 }
  0x1e   : > { %p801_p2 = scmp.ne.s32.totalorder %s799_s17, %s800_s2  ;;  %s805_s29 = scalar_lea.hbm %s1159_s1, 32 }
  0x1f   : > { %p806_p0 = scmp.lt.s32.totalorder %s799_s17, %s1159_s1  ;;  %p807_p5 = scmp.lt.s32.totalorder %s805_s29, %s800_s2 }
  0x20   : > { %p803_p12 = pnand %p802_p10, %p801_p2 }
  0x21   : > { %p808_p7 = por %p807_p5, %p806_p0 }
  0x22   : > { %p804_p13 = pneg %p803_p12 }
  0x24   : > { %p809_p11 = pnand %p808_p7, %p804_p13 }
  0x26   : > { %812 = shalt.err (!%p809_p11)
}
  0x27   : > { %s1175_s22 = smov 8   ;;  %s1176_s14 = smov 128  }
  0x28   : > { %712 = dma.hbm_to_vmem [thread:$0]  (!%p1024_p9), %s270_s13, 256, %s272_s18, %s260_s16, %s1176_s14, %s1176_s14, %s1175_s22  }
  0x29   : > { %283 = sbr.rel (%p988_p8) target bundleno = 860 (0x35c), region = 48  ;;  %s1044_s23 = sand.u32 (!%p988_p8), 1, %s890_s25  }
  0x2a   : > { %s682_s17 = sshll.u32 (!%p988_p8), %s1044_s23, 4  ;;  %s286_s2 = scalar_lea.sflag (!%p988_p8), [#allocation3], %s1044_s23 }
  0x2b   : > { %s289_s9 = scalar_lea.vmem (!%p988_p8), [#allocation2], %s682_s17 }
  0x2e   : > { %873 = dma.done.wait (%p975_p4), %s286_s2, 256  }
  0x2f   : > { %875 = vsyncadd (%p975_p4), %s286_s2, 4294967040 }
  0x30   : > { %877 = dma.done.wait (%p71_p1), [#allocation6], 256  }
  0x31   : > { %879 = vsyncadd (%p71_p1), [#allocation6], 4294967040  ;;  %v339_v0 = vlaneseq  ;;  %p330_p8 = scmp.lt.s32.totalorder %s966_s28, 1  ;;  %vm348_vm1 = vcmask 130048   ;;  %v337_v4 = vld [vmem:[%s289_s9] sm:$0xff]  ;;  %v378_v5 = vld [vmem:[#allocation5 + $0x8] sm:$0xff]  ;;  %s582_s19 = scalar_lea.hbm %s1165_s7, %s966_s28 }
  0x32   : > { %399 = vmatpush.msra.mxu0 %v378_v5  ;;  %695 = vmatpush.msra.mxu3 %v378_v5  ;;  %v377_v7 = vld [vmem:[#allocation5] sm:$0xff]  ;;  %v338_v10 = vld [vmem:[%s289_s9 + $0x8] sm:$0xff]  ;;  %v903_v16 = vmov 0   ;;  %vm463_vm9 = vcmask 130112   ;;  %vm480_vm10 = vcmask 261120   ;;  %s329_s11 = scalar_lea.vmem [#allocation7], %s1044_s23 }
  0x33   : > { %v1057_v1 = vshrl.u32 %v339_v0, 7  ;;  %v1059_v2 = vand.u32 127, %v339_v0  ;;  %s331_s12 = scalar_select %p330_p8, %s966_s28, 1  ;;  %758 = vset.pattern.permute.xlu1 %v903_v16  ;;  %v410_v56 = vld [vmem:[%s1164_s6] sm:$0x1]  ;;  %vm571_vm11 = vcmask 57344  }
  0x34   : > { %400 = vmatpush.msra.mxu0 %v377_v7  ;;  %696 = vmatpush.msra.mxu3 %v377_v7  ;;  %s584_s22 = sshll.u32 %s329_s11, 4  ;;  %s586_s14 = sshll.u32 %s582_s19, 4  ;;  %s585_s22 = int_to_ptr.vmem [resolvable:$true] %s584_s22  ;;  %s587_s14 = int_to_ptr.hbm [resolvable:$true] %s586_s14 }
  0x35   : > { %v341_v3 = vadd.s32 8, %v1057_v1  ;;  %s694_s16 = sshll.u32 %s331_s12, 4  ;;  %vm344_vm0 = vcmp.eq.s32.totalorder %v1057_v1, %v1059_v2  ;;  %v461_v52 = vadd.s32 4294967288, %v1059_v2  ;;  %s574_s17 = scalar_lea.sflag [#allocation4], %s1044_s23 }
  0x36   : > { %s334_s18 = scalar_lea.vmem %s1158_s0, %s694_s16  ;;  %v1068_v6 = vsel %vm344_vm0, 1.0, %v337_v4  ;;  %s842_s2 = sshra.s32 %s587_s14, 4  ;;  %s843_s2 = int_to_ptr.hbm [resolvable:$true] %s842_s2 }
  0x37   : > { %759 = vset.pattern.permute.xlu2 %v341_v3  ;;  %v335_v8 = vld [vmem:[%s334_s18] sm:$0xff]  ;;  %v349_v9 = vsel %vm348_vm1, %v1068_v6, 0.0  ;;  %vm345_vm2 = vcmp.eq.s32.totalorder %v341_v3, %v1059_v2  ;;  %v336_v11 = vld [vmem:[%s334_s18 + $0x8] sm:$0xff]  ;;  %s844_s9 = scalar_lea.hbm %s843_s2, 1  ;;  %s848_s16 = scalar_lea.hbm %s1165_s7, 2 }
  0x38   : > { %350 = vadd.xlane.f32.xlu0 %v349_v9  ;;  %686 = vmatmul.msk.f32.vlgmr.msra.gmra.mxu0 %vm348_vm1, %v335_v8  ;;  %v1074_v12 = vsel %vm345_vm2, 1.0, %v338_v10  ;;  %v546_v10 = vld [vmem:[%s1162_s4 + $0x18] sm:$0xff]  ;;  %p845_p1 = scmp.ne.s32.totalorder %s843_s2, %s844_s9  ;;  %p849_p9 = scmp.lt.s32.totalorder %s843_s2, %s1165_s7 }
  0x39   : > { %687 = vmatmul.msk.f32.vlgmr.msra.gmra.mxu3 %vm348_vm1, %v336_v11  ;;  %v352_v13 = vsel %vm348_vm1, %v1074_v12, 0.0  ;;  %563 = vmatpush.msra.mxu2 %v546_v10  ;;  %v544_v11 = vld [vmem:[%s1162_s4 + $0x8] sm:$0xff]  ;;  %p850_p2 = scmp.lt.s32.totalorder %s848_s16, %s844_s9 }
  0x3a   : > { %p846_p4 = pnand %p845_p1, %p1014_p3 }
  0x3b   : > { %p851_p10 = por %p850_p2, %p849_p9 }
  0x3c   : > { %p847_p11 = pneg %p846_p4 }
  0x3e   : > { %p852_p12 = pnand %p851_p10, %p847_p11 }
  0x40   : > { %353 = vadd.xlane.f32.xlu0 %v352_v13  ;;  %v763_v13 = vld [vmem:[%s1161_s3] ss:$0 sm:$0xff] }
  0xab   : > { %v351_v14 = vpop.xlane.xlu0 %350 }
  0xac   : > { %v355_v15 = vmax.f32 %v351_v14, 1.0 }
  0xae   : > { %764 = vrsqrt.f32 %v355_v15  ;;  %vm363_vm4 = vweird.f32 %v355_v15 }
  0xb3   : > { %v354_v17 = vpop.xlane.xlu0 %353 }
  0xb4   : > { %v765_v18 = vpop.eup %764  ;;  %v356_v19 = vmax.f32 %v354_v17, 1.0 }
  0xb5   : > { %v358_v20 = vmul.f32 %v765_v18, %v355_v15  ;;  %vm364_vm3 = vweird.f32 %v765_v18  ;;  %v402_v0 = vpop.f32.mrf.mxu0 }
  0xb6   : > { %766 = vrsqrt.f32 %v356_v19  ;;  %vm365_vm5 = vmor %vm363_vm4, %vm364_vm3  ;;  %vm373_vm7 = vweird.f32 %v356_v19 }
  0xb7   : > { %v359_v21 = vmul.f32 %v765_v18, %v358_v20 }
  0xb9   : > { %v360_v22 = vmul.f32 0.5, %v359_v21 }
  0xbb   : > { %v361_v23 = vsub.f32 1.5, %v360_v22 }
  0xbc   : > { %v767_v24 = vpop.eup %766  ;;  %v405_v60 = vpop.f32.mrf.mxu3 }
  0xbd   : > { %v362_v25 = vmul.f32 %v765_v18, %v361_v23  ;;  %v368_v26 = vmul.f32 %v767_v24, %v356_v19  ;;  %vm374_vm6 = vweird.f32 %v767_v24 }
  0xbe   : > { %vm375_vm8 = vmor %vm373_vm7, %vm374_vm6 }
  0xbf   : > { %v1079_v27 = vsel %vm365_vm5, %v765_v18, %v362_v25  ;;  %v369_v28 = vmul.f32 %v767_v24, %v368_v26 }
  0xc0   : > { %v413_v29 = vperm.slane %v1079_v27, 0  ;;  %v414_v30 = vperm.slane %v1079_v27, 1  ;;  %v415_v31 = vperm.slane %v1079_v27, 2  ;;  %v416_v32 = vperm.slane %v1079_v27, 3 }
  0xc1   : > { %v417_v33 = vperm.slane %v1079_v27, 4  ;;  %v370_v34 = vmul.f32 0.5, %v369_v28  ;;  %v418_v35 = vperm.slane %v1079_v27, 5  ;;  %v419_v36 = vperm.slane %v1079_v27, 6 }
  0xc2   : > { %429 = vst [vmem:[#allocation1] ss:$9 sm:$0xff] %v413_v29  ;;  %v420_v38 = vperm.slane %v1079_v27, 7 }
  0xc3   : > { %431 = vst [vmem:[#allocation1 + $0x1] ss:$9 sm:$0xff] %v414_v30  ;;  %v371_v37 = vsub.f32 1.5, %v370_v34 }
  0xc4   : > { %433 = vst [vmem:[#allocation1 + $0x2] ss:$9 sm:$0xff] %v415_v31  ;;  %v547_v31 = vld [vmem:[%s1163_s5] sm:$0x1] }
  0xc5   : > { %435 = vst [vmem:[#allocation1 + $0x3] ss:$9 sm:$0xff] %v416_v32  ;;  %v372_v39 = vmul.f32 %v767_v24, %v371_v37 }
  0xc6   : > { %437 = vst [vmem:[#allocation1 + $0x4] ss:$9 sm:$0xff] %v417_v33 }
  0xc7   : > { %439 = vst [vmem:[#allocation1 + $0x5] ss:$9 sm:$0xff] %v418_v35  ;;  %v376_v40 = vsel %vm375_vm8, %v767_v24, %v372_v39 }
  0xc8   : > { %441 = vst [vmem:[#allocation1 + $0x6] ss:$9 sm:$0xff] %v419_v36  ;;  %v421_v41 = vperm.slane %v376_v40, 0  ;;  %v422_v42 = vperm.slane %v376_v40, 1  ;;  %v423_v43 = vperm.slane %v376_v40, 2  ;;  %v424_v44 = vperm.slane %v376_v40, 3 }
  0xc9   : > { %443 = vst [vmem:[#allocation1 + $0x7] ss:$9 sm:$0xff] %v420_v38  ;;  %v425_v46 = vperm.slane %v376_v40, 4  ;;  %v426_v47 = vperm.slane %v376_v40, 5  ;;  %v427_v48 = vperm.slane %v376_v40, 6  ;;  %v428_v49 = vperm.slane %v376_v40, 7 }
  0xca   : > { %v409_v61 = vmul.f32 %v405_v60, %v376_v40 }
  0xd0   : > { %v444_v45 = vld [vmem:[#allocation1] sm:$0xff] }
  0xd1   : > { %455 = vperm.xlu1 %758, %v444_v45   ;;  %445 = vst [vmem:[#allocation1] ss:$9 sm:$0xff] %v421_v41 }
  0xd2   : > { %446 = vst [vmem:[#allocation1 + $0x1] ss:$9 sm:$0xff] %v422_v42 }
  0xd3   : > { %447 = vst [vmem:[#allocation1 + $0x2] ss:$9 sm:$0xff] %v423_v43 }
  0xd4   : > { %448 = vst [vmem:[#allocation1 + $0x3] ss:$9 sm:$0xff] %v424_v44 }
  0xd5   : > { %449 = vst [vmem:[#allocation1 + $0x4] ss:$9 sm:$0xff] %v425_v46 }
  0xd6   : > { %450 = vst [vmem:[#allocation1 + $0x5] ss:$9 sm:$0xff] %v426_v47 }
  0xd7   : > { %451 = vst [vmem:[#allocation1 + $0x6] ss:$9 sm:$0xff] %v427_v48 }
  0xd8   : > { %452 = vst [vmem:[#allocation1 + $0x7] ss:$9 sm:$0xff] %v428_v49 }
  0xdf   : > { %v453_v50 = vld [vmem:[#allocation1] sm:$0xff] }
  0xe0   : > { %458 = vperm.xlu1 %758, %v453_v50  }
 0x143   : > { %v456_v51 = vpop.permute.xlu1 %455 }
 0x144   : > { %v460_v54 = vperm.slane %v456_v51, %v1059_v2  ;;  %v408_v2 = vmul.f32 %v402_v0, %v1079_v27 }
 0x152   : > { %v459_v53 = vpop.permute.xlu1 %458 }
 0x153   : > { %v462_v55 = vperm.slane %v459_v53, %v461_v52 }
 0x155   : > { %v464_v57 = vsel %vm463_vm9, %v462_v55, %v460_v54 }
 0x156   : > { %v466_v58 = vmul.f32 %v464_v57, %v410_v56 }
 0x158   : > { %v467_v59 = vperm.slane %v466_v58, 0 }
 0x15a   : > { %478 = vperm.xlu2 %759, %v467_v59  }
 0x162   : > { %760 = vset.pattern.permute.xlu2 %v1057_v1  ;;  %v904_v1 = vmov 32  }
 0x163   : > { %761 = vset.pattern.permute.xlu0 %v904_v1  ;;  %762 = vset.pattern.permute.xlu1 %v904_v1 }
 0x16a   : > { %472 = vperm.xlu2 %760, %v467_v59  }
 0x1b4   : > { %v479_v62 = vpop.permute.xlu2 %478 }
 0x1b5   : > { %v482_v63 = vsel %vm480_vm10, %v409_v61, %v479_v62 }
 0x1b6   : > { %503 = vmatpush.msra.mxu1 %v482_v63 }
 0x1c4   : > { %v473_v3 = vpop.permute.xlu2 %472 }
 0x1c5   : > { %v481_v4 = vsel %vm480_vm10, %v408_v2, %v473_v3 }
 0x1c6   : > { %504 = vmatpush.msra.mxu1 %v481_v4 }
 0x1c7   : > { %688 = vmatmul.msk.f32.vlgmr.msra.gmra.mxu1 %vm348_vm1, %v1068_v6  ;;  %v545_v6 = vld [vmem:[%s1162_s4 + $0x10] sm:$0xff] }
 0x1c8   : > { %564 = vmatpush.msra.mxu2 %v545_v6 }
 0x1ca   : > { %565 = vmatpush.msra.mxu2 %v544_v11 }
 0x1cf   : > { %689 = vmatmul.msk.f32.gmra.mxu1 %vm348_vm1, %v1074_v12  ;;  %v543_v12 = vld [vmem:[%s1162_s4] sm:$0xff] }
 0x1d0   : > { %566 = vmatpush.msra.mxu2 %v543_v12 }
 0x244   : > { %v506_v5 = vpop.f32.mrf.mxu1 }
 0x245   : > { %v512_v7 = vmul.f32 %v506_v5, %v1079_v27 }
 0x247   : > { %524 = vperm.xlu0 %761, %v512_v7   ;;  %v518_v14 = vadd.f32 %v763_v13, %v512_v7 }
 0x249   : > { %v520_v17 = vmax.f32 %v518_v14, 0.0 }
 0x24c   : > { %v509_v8 = vpop.f32.mrf.mxu1 }
 0x24d   : > { %v513_v9 = vmul.f32 %v509_v8, %v376_v40 }
 0x24f   : > { %529 = vperm.xlu1 %762, %v513_v9   ;;  %v519_v15 = vadd.f32 %v763_v13, %v513_v9 }
 0x251   : > { %v521_v19 = vmax.f32 %v519_v15, 0.0 }
 0x2b9   : > { %v525_v16 = vpop.permute.xlu0 %524 }
 0x2ba   : > { %v532_v18 = vmul.f32 %v525_v16, %v520_v17 }
 0x2bc   : > { %v534_v22 = vsel %vm480_vm10, %v532_v18, 0.0 }
 0x2c1   : > { %v530_v20 = vpop.permute.xlu1 %529 }
 0x2c2   : > { %v533_v21 = vmul.f32 %v530_v20, %v521_v19 }
 0x2c4   : > { %v535_v23 = vsel %vm480_vm10, %v533_v21, 0.0 }
 0x2c5   : > { %v536_v24 = vadd.f32 %v535_v23, %v534_v22 }
 0x2c7   : > { %v537_v25 = vrot.slane %v536_v24, 4 }
 0x2c9   : > { %v538_v26 = vadd.f32 %v537_v25, %v536_v24 }
 0x2cb   : > { %v539_v27 = vrot.slane %v538_v26, 2 }
 0x2cd   : > { %v540_v28 = vadd.f32 %v539_v27, %v538_v26 }
 0x2cf   : > { %v541_v29 = vrot.slane %v540_v28, 1 }
 0x2d1   : > { %v542_v30 = vadd.f32 %v541_v29, %v540_v28 }
 0x2d3   : > { %690 = vmatmul.msk.f32.vlgmr.msra.gmra.mxu2 %vm480_vm10, %v542_v30 }
 0x356   : > { %v568_v32 = vpop.f32.mrf.mxu2 }
 0x357   : > { %v569_v33 = vadd.f32 %v568_v32, %v547_v31 }
 0x359   : > { %572 = vst.msk [vmem:[%s329_s11] sm:$0x1] %vm571_vm11, %v569_v33 }
 0x35a   : > { %855 = shalt.err (!%p852_p12)
}
 0x35b   : > { %703 = dma.vmem_to_hbm [thread:$0]  (%p1014_p3), %s585_s22, 16, %s587_s14, %s574_s17  }
 0x35c PF: > { %s598_s23 = sand.u32 1, %s886_s24   ;;  %p1177_p13 = scmp.ge.s32.totalorder %s898_s27, 2 }
 0x35d   : > { %s599_s18 = scalar_lea.sflag [#allocation4], %s598_s23 }
 0x35e   : > { %p714_p0 = pnand %p1177_p13, %p980_p6 }
 0x360   : > { %p715_p5 = pneg %p714_p0 }
 0x362   : > { %881 = dma.done.wait (%p715_p5), %s599_s18, 16  }
 0x363   : > { %883 = vsyncadd (%p715_p5), %s599_s18, 4294967280  ;;  %p21_p7 = scmp.ge.s32.totalorder %s998_s15, 4   ;;  %s1178_s24 = smov %s890_s25 }
 0x364   : > { %s1179_s25 = smov %s894_s26  ;;  %s1180_s26 = smov %s1010_s20 }
 0x365   : > { %s1181_s27 = smov %s998_s15  ;;  %23 = sbr.rel (!%p21_p7) target bundleno = 8 (0x8), region = 107 }
 0x36a   :  { %604 = vsyncpa [#allocation3], 1 }
 0x36b   :  { %606 = vsyncpa [#allocation3 + $0x1], 1 }
 0x36c   :  { %607 = vsyncpa [#allocation6], 1 }
 0x36d   :  { %608 = vsyncpa [#allocation4], 1 }
 0x36e   :  { %610 = vsyncpa [#allocation4 + $0x1], 1 }

</bundles_post_ra>
